<compile_context>
chip_gen: v5e
topology: v5e:2x2
jax: 0.10.0
libtpu: 0.0.40
codegen_flags: <defaults>
</compile_context>

<pallas_src>
import jax
import jax.numpy as jnp
from jax.experimental import pallas as pl
from jax.experimental.pallas import tpu as pltpu

KS = (2, 3, 4, 5, 6, 7)                 # conv2 .. conv7 kernel heights
K_MAX = KS[-1]                          # 7
L = 20                                  # char_max_len implied by the hard-coded 48
POOLED = tuple((L - k + 1) // 2 for k in KS)   # (9, 9, 8, 8, 7, 7)
P_MAX = max(POOLED)                     # 9
N_POOL = sum(POOLED)                    # 48


def _round_up(x, m):
    return ((x + m - 1) // m) * m


# ----------------------------------------------------------------------------
# Fused kernel: conv2..7 + ReLU + maxpool(2) + Linear + LogSoftmax + Linear
#               + Hardtanh, one batch tile per grid step.
# ----------------------------------------------------------------------------
def _fused_kernel(x_ref, wc_ref, bc_ref, w1f_ref, b1_ref, w2_ref, b2_ref,
                  out_ref):
    Bt = out_ref.shape[0]                 # batch tile (multiple of 8)
    E = x_ref.shape[-1] // L              # char emb dim
    LE = L * E
    KWE = K_MAX * E                       # im2col window width (7E lanes)
    Gp = wc_ref.shape[-1]                 # padded packed conv width (>= 6F)

    x = x_ref[...]                        # single load of the whole tile (Bt, L*E)

    def window(t):
        # Contiguous lane slice covering sequence rows t .. t+6.
        lo = t * E
        hi = lo + KWE
        if hi <= LE:
            return x[:, lo:hi]
        # Tail windows (t >= L-6) run past the sequence end.  Those lanes only
        # multiply zero-padded wc rows / feed (k, p) combos whose w1f rows are
        # zero, so a zero fill is mathematically inert.
        return jnp.concatenate(
            [x[:, lo:LE], jnp.zeros((Bt, hi - LE), x.dtype)], axis=-1)

    # im2col for ALL conv positions, even positions first then odd positions:
    #   rows [p*Bt:(p+1)*Bt]          -> conv position 2p
    #   rows [(P_MAX+p)*Bt : ...]     -> conv position 2p+1
    a = jnp.concatenate([window(2 * p) for p in range(P_MAX)]
                        + [window(2 * p + 1) for p in range(P_MAX)],
                        axis=0)                                   # (18*Bt, 7E)

    # One packed MXU matmul evaluates all six convs at all 18 positions.
    conv = jnp.maximum(
        jnp.dot(a, wc_ref[...], preferred_element_type=jnp.float32)
        + bc_ref[...], 0.0)                                       # (18*Bt, Gp) f32

    # maxpool(kernel=2, stride=2): pairwise max of the even/odd halves.
    half = P_MAX * Bt
    pooled = jnp.maximum(conv[:half], conv[half:])                # (9*Bt, Gp) f32

    # Feature-major flatten + Linear(F*48, C): lay the 9 pooled slabs side by
    # side along lanes (128-aligned, unmasked copies) and do ONE matmul.
    pw = pooled.astype(w1f_ref.dtype)
    pooled_wide = jnp.concatenate(
        [pw[p * Bt:(p + 1) * Bt] for p in range(P_MAX)], axis=-1)  # (Bt, 9*Gp)
    h = jnp.dot(pooled_wide, w1f_ref[...],
                preferred_element_type=jnp.float32) + b1_ref[...]  # (Bt, Cp)

    # LogSoftmax(dim=1).  Padded class columns carry bias -1e9 -> exp underflows
    # to 0 and they never influence the max / normalizer.
    m = jnp.max(h, axis=1, keepdims=True)
    lse = m + jnp.log(jnp.sum(jnp.exp(h - m), axis=1, keepdims=True))
    logp = h - lse

    # Linear(C, EMB) + Hardtanh(-3, 3).  Padded rows/cols of w2/b2 are zero.
    o = jnp.dot(logp.astype(w2_ref.dtype), w2_ref[...],
                preferred_element_type=jnp.float32) + b2_ref[...]
    out_ref[...] = jnp.clip(o, -3.0, 3.0).astype(out_ref.dtype)


def mimick_cnn4_forward(inputs, params, *, batch_tile=512):
    """inputs: (N, 1, L, E) NCHW as in PyTorch.  params: output of pack_params."""
    N, _, Lin, E = inputs.shape
    assert Lin == L, "char_max_len must be 20 (Linear(num_feature*48, ...))"

    wc, bc = params["wc"], params["bc"]
    w1f, b1 = params["w1f"], params["b1"]
    w2, b2 = params["w2"], params["b2"]
    EMB = params["emb_dim"]
    EMBp = w2.shape[-1]

    # Flat lane-dense layout (N, L*E): free reshape, no transpose, no HBM round trip.
    x_flat = inputs[:, 0].reshape(N, L * E).astype(wc.dtype)

    # Tile selection: >=2 grid steps when possible (v7x has 2 TensorCores),
    # large tiles otherwise (per-step overhead ~0.35us).  Pad batch to a whole
    # number of tiles so every block is well defined (padded rows are zeros).
    batch_tile = _round_up(max(batch_tile, 8), 8)
    N8 = _round_up(max(N, 1), 8)
    Bt = N8 if N8 <= 8 else min(batch_tile, _round_up(N8 // 2, 8))
    Np = _round_up(N, Bt)
    if Np != N:
        x_flat = jnp.pad(x_flat, ((0, Np - N), (0, 0)))
    grid = (Np // Bt,)

    out = pl.pallas_call(
        _fused_kernel,
        out_shape=jax.ShapeDtypeStruct((Np, EMBp), jnp.float32),
        grid_spec=pltpu.PrefetchScalarGridSpec(
            num_scalar_prefetch=0,
            grid=grid,
            in_specs=[
                pl.BlockSpec((Bt, L * E), lambda i: (i, 0)),     # x tile
                pl.BlockSpec(wc.shape, lambda i: (0, 0)),        # resident weights
                pl.BlockSpec(bc.shape, lambda i: (0, 0)),
                pl.BlockSpec(w1f.shape, lambda i: (0, 0)),
                pl.BlockSpec(b1.shape, lambda i: (0, 0)),
                pl.BlockSpec(w2.shape, lambda i: (0, 0)),
                pl.BlockSpec(b2.shape, lambda i: (0, 0)),
            ],
            out_specs=pl.BlockSpec((Bt, EMBp), lambda i: (i, 0)),
        ),
        compiler_params=pltpu.CompilerParams(
            dimension_semantics=("parallel",),        # batch tiles shard across TCs
            vmem_limit_bytes=48 * 1024 * 1024),       # fits v7x (64 MiB) / v5e / v6e
    )(x_flat, wc, bc, w1f, b1, w2, b2)

    return out[:N, :EMB]


# ----------------------------------------------------------------------------
# Parameter packing (done once at init, outside the kernel)
# ----------------------------------------------------------------------------
def pack_params(raw, *, compute_dtype=jnp.float32):
    """Pack raw PyTorch-layout params into the fused kernel layout.

    compute_dtype=jnp.bfloat16 gives MXU-native matmul operands on v6e/v7x
    (f32 accumulation and f32 elementwise are kept inside the kernel).
    """
    conv_w, conv_b = raw["conv_w"], raw["conv_b"]
    w1, b1, w2, b2 = raw["w1"], raw["b1"], raw["w2"], raw["b2"]
    E, F = conv_w[0].shape[1], conv_w[0].shape[-1]
    C = w1.shape[-1]
    EMB = w2.shape[-1]

    G = len(KS) * F                       # packed conv output width (6F)
    Gp = _round_up(G, 128)                # lane-dense padding
    Cp = _round_up(C, 128)
    EMBp = _round_up(EMB, 128)

    # Packed conv weight (7E, Gp): column block ki holds conv k=KS[ki];
    # rows dk*E:(dk+1)*E are W_k[dk], zero for dk >= k; columns >= 6F zero.
    wc = jnp.zeros((K_MAX * E, Gp), jnp.float32)
    bc = jnp.zeros((1, Gp), jnp.float32)
    for ki, k in enumerate(KS):
        wk = conv_w[ki]                                            # (k, E, F)
        wc = wc.at[:k * E, ki * F:(ki + 1) * F].set(wk.reshape(k * E, F))
        bc = bc.at[:, ki * F:(ki + 1) * F].set(conv_b[ki].reshape(1, F))

    # Head weight: torch flatten index f*48 + (off_k + p)  ->  w1f[p*Gp + ki*F + f, :].
    # Rows for invalid pooled positions (p >= P_k) and padded columns stay zero,
    # so out-of-range / padded conv outputs never contribute.
    w1_3 = w1.reshape(F, N_POOL, C)
    w1f = jnp.zeros((P_MAX * Gp, Cp), jnp.float32)
    off = 0
    for ki, _k in enumerate(KS):
        Pk = POOLED[ki]
        blk = jnp.transpose(w1_3[:, off:off + Pk, :], (1, 0, 2))   # (Pk, F, C)
        for p in range(Pk):
            r0 = p * Gp + ki * F
            w1f = w1f.at[r0:r0 + F, :C].set(blk[p])
        off += Pk

    # Padded class columns get a large negative bias so LogSoftmax ignores them.
    b1p = jnp.full((1, Cp), -1e9, jnp.float32).at[:, :C].set(b1.reshape(1, C))
    w2p = jnp.zeros((Cp, EMBp), jnp.float32).at[:C, :EMB].set(w2)
    b2p = jnp.zeros((1, EMBp), jnp.float32).at[:, :EMB].set(b2.reshape(1, EMB))

    return dict(
        wc=wc.astype(compute_dtype),
        bc=bc,                              # biases stay f32 (accumulation dtype)
        w1f=w1f.astype(compute_dtype),
        b1=b1p,
        w2=w2p.astype(compute_dtype),
        b2=b2p,
        emb_dim=EMB,
    )


def init_raw_params(key, E, F, C, EMB):
    keys = jax.random.split(key, 2 * len(KS) + 4)
    conv_w, conv_b = [], []
    for i, k in enumerate(KS):
        # PyTorch Conv2d weight (F,1,k,E) stored here as (k, E, F)
        conv_w.append(0.05 * jax.random.normal(keys[2 * i], (k, E, F), jnp.float32))
        conv_b.append(0.05 * jax.random.normal(keys[2 * i + 1], (1, F), jnp.float32))
    D = F * N_POOL
    w1 = 0.05 * jax.random.normal(keys[-4], (D, C), jnp.float32)
    b1 = 0.05 * jax.random.normal(keys[-3], (1, C), jnp.float32)
    w2 = 0.05 * jax.random.normal(keys[-2], (C, EMB), jnp.float32)
    b2 = 0.05 * jax.random.normal(keys[-1], (1, EMB), jnp.float32)
    return dict(conv_w=conv_w, conv_b=conv_b, w1=w1, b1=b1, w2=w2, b2=b2)


# ----------------------------------------------------------------------------
# Pure-JAX reference (mirrors the PyTorch forward) for correctness checking
# ----------------------------------------------------------------------------
def reference_forward(inputs, raw):
    x = inputs[:, 0]                                                  # (N, L, E)
    N = x.shape[0]
    pooled_list = []
    for ki, k in enumerate(KS):
        T = L - k + 1
        w = raw["conv_w"][ki]
        acc = jnp.zeros((N, T, w.shape[-1]), jnp.float32)
        for dk in range(k):
            acc = acc + jnp.einsum("nte,ef->ntf", x[:, dk:dk + T, :], w[dk])
        conv = jnp.maximum(acc + raw["conv_b"][ki], 0.0)
        P = T // 2
        pooled = jnp.maximum(conv[:, 0:2 * P:2, :], conv[:, 1:2 * P:2, :])
        pooled_list.append(pooled)
    cat = jnp.concatenate(pooled_list, axis=1)                        # (N, 48, F)
    feat = jnp.transpose(cat, (0, 2, 1)).reshape(N, -1)               # feature-major
    h = feat @ raw["w1"] + raw["b1"]
    logp = h - jax.scipy.special.logsumexp(h, axis=1, keepdims=True)
    o = logp @ raw["w2"] + raw["b2"]
    return jnp.clip(o, -3.0, 3.0)


if __name__ == "__main__":
    key = jax.random.PRNGKey(0)
    N, E = 2, 32                 # batch, char_emb_dim (L is fixed at 20 by the 48)
    F, C, EMB = 8, 16, 32        # num_feature, classif, emb_dim

    k_in, k_p = jax.random.split(key)
    inputs = jax.random.normal(k_in, (N, 1, L, E), jnp.float32)
    raw = init_raw_params(k_p, E=E, F=F, C=C, EMB=EMB)
    ref = reference_forward(inputs, raw)

    # f32 operand path: strict check.
    params = pack_params(raw)
    out = jax.block_until_ready(mimick_cnn4_forward(inputs, params))
    assert out.shape == (N, EMB), out.shape
    assert jnp.allclose(out, ref, atol=1e-4, rtol=1e-4), "f32 mismatch vs reference"

    # bf16 operand path (MXU-native on v6e/v7x, f32 accumulation): loose check.
    params_bf16 = pack_params(raw, compute_dtype=jnp.bfloat16)
    out_bf16 = jax.block_until_ready(mimick_cnn4_forward(inputs, params_bf16))
    assert out_bf16.shape == (N, EMB), out_bf16.shape
    assert jnp.allclose(out_bf16, ref, atol=1e-1, rtol=1e-1), "bf16 mismatch vs reference"

    print("KERNEL_OK")
</pallas_src>

<mosaic_0001>
module attributes {stable_mosaic.version = 11 : i64} {
  func.func @_fused_kernel(%arg0: i32, %arg1: memref<8x640xf32, #tpu.memory_space<vmem>>, %arg2: memref<224x128xf32, #tpu.memory_space<vmem>>, %arg3: memref<1x128xf32, #tpu.memory_space<vmem>>, %arg4: memref<1152x128xf32, #tpu.memory_space<vmem>>, %arg5: memref<1x128xf32, #tpu.memory_space<vmem>>, %arg6: memref<128x128xf32, #tpu.memory_space<vmem>>, %arg7: memref<1x128xf32, #tpu.memory_space<vmem>>, %arg8: memref<8x128xf32, #tpu.memory_space<vmem>>) attributes {dimension_semantics = [#tpu.dimension_semantics<parallel>], iteration_bounds = array<i64: 1>, scalar_prefetch = 0 : i64, scratch_operands = 0 : i64, tpu.core_type = #tpu.core_type<tc>, window_params = [{transform_indices = @transform_0, window_bounds = array<i64: 8, 640>}, {pipeline_mode = #tpu.pipeline_mode<synchronous>, transform_indices = @transform_1, window_bounds = array<i64: 224, 128>}, {pipeline_mode = #tpu.pipeline_mode<synchronous>, transform_indices = @transform_2, window_bounds = array<i64: 1, 128>}, {pipeline_mode = #tpu.pipeline_mode<synchronous>, transform_indices = @transform_3, window_bounds = array<i64: 1152, 128>}, {pipeline_mode = #tpu.pipeline_mode<synchronous>, transform_indices = @transform_4, window_bounds = array<i64: 1, 128>}, {pipeline_mode = #tpu.pipeline_mode<synchronous>, transform_indices = @transform_5, window_bounds = array<i64: 128, 128>}, {pipeline_mode = #tpu.pipeline_mode<synchronous>, transform_indices = @transform_6, window_bounds = array<i64: 1, 128>}, {transform_indices = @transform_7, window_bounds = array<i64: 8, 128>}]} {
    %c0 = arith.constant 0 : index
    %c0_0 = arith.constant 0 : index
    %0 = vector.load %arg1[%c0, %c0_0] : memref<8x640xf32, #tpu.memory_space<vmem>>, vector<8x640xf32>
    %1 = vector.extract_strided_slice %0 {offsets = [0, 0], sizes = [8, 224], strides = [1, 1]} : vector<8x640xf32> to vector<8x224xf32>
    %2 = vector.extract_strided_slice %0 {offsets = [0, 64], sizes = [8, 224], strides = [1, 1]} : vector<8x640xf32> to vector<8x224xf32>
    %3 = vector.extract_strided_slice %0 {offsets = [0, 128], sizes = [8, 224], strides = [1, 1]} : vector<8x640xf32> to vector<8x224xf32>
    %4 = vector.extract_strided_slice %0 {offsets = [0, 192], sizes = [8, 224], strides = [1, 1]} : vector<8x640xf32> to vector<8x224xf32>
    %5 = vector.extract_strided_slice %0 {offsets = [0, 256], sizes = [8, 224], strides = [1, 1]} : vector<8x640xf32> to vector<8x224xf32>
    %6 = vector.extract_strided_slice %0 {offsets = [0, 320], sizes = [8, 224], strides = [1, 1]} : vector<8x640xf32> to vector<8x224xf32>
    %7 = vector.extract_strided_slice %0 {offsets = [0, 384], sizes = [8, 224], strides = [1, 1]} : vector<8x640xf32> to vector<8x224xf32>
    %8 = vector.extract_strided_slice %0 {offsets = [0, 448], sizes = [8, 192], strides = [1, 1]} : vector<8x640xf32> to vector<8x192xf32>
    %cst = arith.constant 0.000000e+00 : f32
    %9 = vector.broadcast %cst : f32 to vector<8x32xf32>
    %10 = tpu.concatenate %8, %9 in 1 : vector<8x192xf32>, vector<8x32xf32> -> vector<8x224xf32>
    %11 = vector.extract_strided_slice %0 {offsets = [0, 512], sizes = [8, 128], strides = [1, 1]} : vector<8x640xf32> to vector<8x128xf32>
    %cst_1 = arith.constant 0.000000e+00 : f32
    %12 = vector.broadcast %cst_1 : f32 to vector<8x96xf32>
    %13 = tpu.concatenate %11, %12 in 1 : vector<8x128xf32>, vector<8x96xf32> -> vector<8x224xf32>
    %14 = vector.extract_strided_slice %0 {offsets = [0, 32], sizes = [8, 224], strides = [1, 1]} : vector<8x640xf32> to vector<8x224xf32>
    %15 = vector.extract_strided_slice %0 {offsets = [0, 96], sizes = [8, 224], strides = [1, 1]} : vector<8x640xf32> to vector<8x224xf32>
    %16 = vector.extract_strided_slice %0 {offsets = [0, 160], sizes = [8, 224], strides = [1, 1]} : vector<8x640xf32> to vector<8x224xf32>
    %17 = vector.extract_strided_slice %0 {offsets = [0, 224], sizes = [8, 224], strides = [1, 1]} : vector<8x640xf32> to vector<8x224xf32>
    %18 = vector.extract_strided_slice %0 {offsets = [0, 288], sizes = [8, 224], strides = [1, 1]} : vector<8x640xf32> to vector<8x224xf32>
    %19 = vector.extract_strided_slice %0 {offsets = [0, 352], sizes = [8, 224], strides = [1, 1]} : vector<8x640xf32> to vector<8x224xf32>
    %20 = vector.extract_strided_slice %0 {offsets = [0, 416], sizes = [8, 224], strides = [1, 1]} : vector<8x640xf32> to vector<8x224xf32>
    %21 = vector.extract_strided_slice %0 {offsets = [0, 480], sizes = [8, 160], strides = [1, 1]} : vector<8x640xf32> to vector<8x160xf32>
    %cst_2 = arith.constant 0.000000e+00 : f32
    %22 = vector.broadcast %cst_2 : f32 to vector<8x64xf32>
    %23 = tpu.concatenate %21, %22 in 1 : vector<8x160xf32>, vector<8x64xf32> -> vector<8x224xf32>
    %24 = vector.extract_strided_slice %0 {offsets = [0, 544], sizes = [8, 96], strides = [1, 1]} : vector<8x640xf32> to vector<8x96xf32>
    %cst_3 = arith.constant 0.000000e+00 : f32
    %25 = vector.broadcast %cst_3 : f32 to vector<8x128xf32>
    %26 = tpu.concatenate %24, %25 in 1 : vector<8x96xf32>, vector<8x128xf32> -> vector<8x224xf32>
    %27 = tpu.concatenate %1, %2, %3, %4, %5, %6, %7, %10, %13, %14, %15, %16, %17, %18, %19, %20 in 0 : vector<8x224xf32>, vector<8x224xf32>, vector<8x224xf32>, vector<8x224xf32>, vector<8x224xf32>, vector<8x224xf32>, vector<8x224xf32>, vector<8x224xf32>, vector<8x224xf32>, vector<8x224xf32>, vector<8x224xf32>, vector<8x224xf32>, vector<8x224xf32>, vector<8x224xf32>, vector<8x224xf32>, vector<8x224xf32> -> vector<128x224xf32>
    %28 = tpu.concatenate %23, %26 in 0 : vector<8x224xf32>, vector<8x224xf32> -> vector<16x224xf32>
    %29 = tpu.concatenate %27, %28 in 0 : vector<128x224xf32>, vector<16x224xf32> -> vector<144x224xf32>
    %c0_4 = arith.constant 0 : index
    %c0_5 = arith.constant 0 : index
    %30 = vector.load %arg2[%c0_4, %c0_5] : memref<224x128xf32, #tpu.memory_space<vmem>>, vector<224x128xf32>
    %cst_6 = arith.constant dense<0.000000e+00> : vector<144x128xf32>
    %31 = tpu.matmul %29, %30, %cst_6 {dimension_numbers = #tpu.dot_dimension_numbers<[1], [0], [0], [1], [0, 0, 1, 1], [], []>} : vector<144x224xf32>, vector<224x128xf32>, vector<144x128xf32> -> vector<144x128xf32>
    %c0_7 = arith.constant 0 : index
    %c0_8 = arith.constant 0 : index
    %32 = vector.load %arg3[%c0_7, %c0_8] : memref<1x128xf32, #tpu.memory_space<vmem>>, vector<1x128xf32>
    %33 = vector.broadcast %32 : vector<1x128xf32> to vector<144x128xf32>
    %34 = arith.addf %31, %33 : vector<144x128xf32>
    %cst_9 = arith.constant 0.000000e+00 : f32
    %35 = vector.broadcast %cst_9 : f32 to vector<144x128xf32>
    %36 = arith.maximumf %34, %35 : vector<144x128xf32>
    %37 = vector.extract_strided_slice %36 {offsets = [0, 0], sizes = [72, 128], strides = [1, 1]} : vector<144x128xf32> to vector<72x128xf32>
    %38 = vector.extract_strided_slice %36 {offsets = [72, 0], sizes = [72, 128], strides = [1, 1]} : vector<144x128xf32> to vector<72x128xf32>
    %39 = arith.maximumf %37, %38 : vector<72x128xf32>
    %40 = vector.extract_strided_slice %39 {offsets = [0, 0], sizes = [8, 128], strides = [1, 1]} : vector<72x128xf32> to vector<8x128xf32>
    %41 = vector.extract_strided_slice %39 {offsets = [8, 0], sizes = [8, 128], strides = [1, 1]} : vector<72x128xf32> to vector<8x128xf32>
    %42 = vector.extract_strided_slice %39 {offsets = [16, 0], sizes = [8, 128], strides = [1, 1]} : vector<72x128xf32> to vector<8x128xf32>
    %43 = vector.extract_strided_slice %39 {offsets = [24, 0], sizes = [8, 128], strides = [1, 1]} : vector<72x128xf32> to vector<8x128xf32>
    %44 = vector.extract_strided_slice %39 {offsets = [32, 0], sizes = [8, 128], strides = [1, 1]} : vector<72x128xf32> to vector<8x128xf32>
    %45 = vector.extract_strided_slice %39 {offsets = [40, 0], sizes = [8, 128], strides = [1, 1]} : vector<72x128xf32> to vector<8x128xf32>
    %46 = vector.extract_strided_slice %39 {offsets = [48, 0], sizes = [8, 128], strides = [1, 1]} : vector<72x128xf32> to vector<8x128xf32>
    %47 = vector.extract_strided_slice %39 {offsets = [56, 0], sizes = [8, 128], strides = [1, 1]} : vector<72x128xf32> to vector<8x128xf32>
    %48 = vector.extract_strided_slice %39 {offsets = [64, 0], sizes = [8, 128], strides = [1, 1]} : vector<72x128xf32> to vector<8x128xf32>
    %49 = tpu.concatenate %40, %41, %42, %43, %44, %45, %46, %47, %48 in 1 : vector<8x128xf32>, vector<8x128xf32>, vector<8x128xf32>, vector<8x128xf32>, vector<8x128xf32>, vector<8x128xf32>, vector<8x128xf32>, vector<8x128xf32>, vector<8x128xf32> -> vector<8x1152xf32>
    %c0_10 = arith.constant 0 : index
    %c0_11 = arith.constant 0 : index
    %50 = vector.load %arg4[%c0_10, %c0_11] : memref<1152x128xf32, #tpu.memory_space<vmem>>, vector<1152x128xf32>
    %cst_12 = arith.constant dense<0.000000e+00> : vector<8x128xf32>
    %51 = tpu.matmul %49, %50, %cst_12 {dimension_numbers = #tpu.dot_dimension_numbers<[1], [0], [0], [1], [0, 0, 1, 1], [], []>} : vector<8x1152xf32>, vector<1152x128xf32>, vector<8x128xf32> -> vector<8x128xf32>
    %c0_13 = arith.constant 0 : index
    %c0_14 = arith.constant 0 : index
    %52 = vector.load %arg5[%c0_13, %c0_14] : memref<1x128xf32, #tpu.memory_space<vmem>>, vector<1x128xf32>
    %53 = vector.broadcast %52 : vector<1x128xf32> to vector<8x128xf32>
    %54 = arith.addf %51, %53 : vector<8x128xf32>
    %cst_15 = arith.constant dense<0xFF800000> : vector<8xf32>
    %55 = vector.multi_reduction <maximumf>, %54, %cst_15 [1] : vector<8x128xf32> to vector<8xf32>
    %56 = vector.shape_cast %55 : vector<8xf32> to vector<8x1xf32>
    %57 = vector.broadcast %56 : vector<8x1xf32> to vector<8x128xf32>
    %58 = arith.subf %54, %57 : vector<8x128xf32>
    %59 = math.exp %58 : vector<8x128xf32>
    %cst_16 = arith.constant dense<0.000000e+00> : vector<8xf32>
    %60 = vector.multi_reduction <add>, %59, %cst_16 [1] : vector<8x128xf32> to vector<8xf32>
    %61 = vector.shape_cast %60 : vector<8xf32> to vector<8x1xf32>
    %62 = math.log %61 : vector<8x1xf32>
    %63 = arith.addf %56, %62 : vector<8x1xf32>
    %64 = vector.broadcast %63 : vector<8x1xf32> to vector<8x128xf32>
    %65 = arith.subf %54, %64 : vector<8x128xf32>
    %c0_17 = arith.constant 0 : index
    %c0_18 = arith.constant 0 : index
    %66 = vector.load %arg6[%c0_17, %c0_18] : memref<128x128xf32, #tpu.memory_space<vmem>>, vector<128x128xf32>
    %cst_19 = arith.constant dense<0.000000e+00> : vector<8x128xf32>
    %67 = tpu.matmul %65, %66, %cst_19 {dimension_numbers = #tpu.dot_dimension_numbers<[1], [0], [0], [1], [0, 0, 1, 1], [], []>} : vector<8x128xf32>, vector<128x128xf32>, vector<8x128xf32> -> vector<8x128xf32>
    %c0_20 = arith.constant 0 : index
    %c0_21 = arith.constant 0 : index
    %68 = vector.load %arg7[%c0_20, %c0_21] : memref<1x128xf32, #tpu.memory_space<vmem>>, vector<1x128xf32>
    %69 = vector.broadcast %68 : vector<1x128xf32> to vector<8x128xf32>
    %70 = arith.addf %67, %69 : vector<8x128xf32>
    %cst_22 = arith.constant -3.000000e+00 : f32
    %cst_23 = arith.constant 3.000000e+00 : f32
    %71 = vector.broadcast %cst_22 : f32 to vector<8x128xf32>
    %72 = arith.maximumf %71, %70 : vector<8x128xf32>
    %73 = vector.broadcast %cst_23 : f32 to vector<8x128xf32>
    %74 = arith.minimumf %73, %72 : vector<8x128xf32>
    %c0_24 = arith.constant 0 : index
    %c0_25 = arith.constant 0 : index
    %75 = vector.load %arg8[%c0_24, %c0_25] : memref<8x128xf32, #tpu.memory_space<vmem>>, vector<8x128xf32>
    tpu.vector_store %arg8[%c0_24, %c0_25], %74 {strides = array<i32>} : memref<8x128xf32, #tpu.memory_space<vmem>>, vector<8x128xf32>,
    return
  }
  func.func @transform_0(%arg0: i32) -> (i32, i32) {
    %c0_i32 = arith.constant 0 : i32
    %c0_i32_0 = arith.constant 0 : i32
    return %arg0, %c0_i32 : i32, i32
  }
  func.func @transform_1(%arg0: i32) -> (i32, i32) {
    %c0_i32 = arith.constant 0 : i32
    %c0_i32_0 = arith.constant 0 : i32
    %c0_i32_1 = arith.constant 0 : i32
    return %c0_i32, %c0_i32_0 : i32, i32
  }
  func.func @transform_2(%arg0: i32) -> (i32, i32) {
    %c0_i32 = arith.constant 0 : i32
    %c0_i32_0 = arith.constant 0 : i32
    %c0_i32_1 = arith.constant 0 : i32
    return %c0_i32, %c0_i32_0 : i32, i32
  }
  func.func @transform_3(%arg0: i32) -> (i32, i32) {
    %c0_i32 = arith.constant 0 : i32
    %c0_i32_0 = arith.constant 0 : i32
    %c0_i32_1 = arith.constant 0 : i32
    return %c0_i32, %c0_i32_0 : i32, i32
  }
  func.func @transform_4(%arg0: i32) -> (i32, i32) {
    %c0_i32 = arith.constant 0 : i32
    %c0_i32_0 = arith.constant 0 : i32
    %c0_i32_1 = arith.constant 0 : i32
    return %c0_i32, %c0_i32_0 : i32, i32
  }
  func.func @transform_5(%arg0: i32) -> (i32, i32) {
    %c0_i32 = arith.constant 0 : i32
    %c0_i32_0 = arith.constant 0 : i32
    %c0_i32_1 = arith.constant 0 : i32
    return %c0_i32, %c0_i32_0 : i32, i32
  }
  func.func @transform_6(%arg0: i32) -> (i32, i32) {
    %c0_i32 = arith.constant 0 : i32
    %c0_i32_0 = arith.constant 0 : i32
    %c0_i32_1 = arith.constant 0 : i32
    return %c0_i32, %c0_i32_0 : i32, i32
  }
  func.func @transform_7(%arg0: i32) -> (i32, i32) {
    %c0_i32 = arith.constant 0 : i32
    %c0_i32_0 = arith.constant 0 : i32
    return %arg0, %c0_i32 : i32, i32
  }
}

</mosaic_0001>

<bundles_post_ra>
// kernel: tpu_custom_call.1
= control target key start
LH: loop header
LB: loop body
LE: loop exit
PB: predicated region body
PF: predicated region fallthrough
CT: control target
= control target key end

     0   :  { %12 = vsyncpa [#allocation3], 0  ;;  %s1163_s0 = inlined_call_operand.hbm [shape: f32[8,640], index: 0, kind: input, shape index: {}]   ;;  %s1164_s1 = inlined_call_operand.hbm [shape: f32[224,128], index: 1, kind: input, shape index: {}]   ;;  %s1165_s2 = inlined_call_operand.vmem [shape: f32[1,128], index: 2, kind: input, shape index: {}]   ;;  %s1166_s3 = inlined_call_operand.hbm [shape: f32[1152,128], index: 3, kind: input, shape index: {}]   ;;  %s1167_s4 = inlined_call_operand.vmem [shape: f32[1,128], index: 4, kind: input, shape index: {}]   ;;  %s1168_s5 = inlined_call_operand.hbm [shape: f32[128,128], index: 5, kind: input, shape index: {}]   ;;  %s1169_s6 = inlined_call_operand.vmem [shape: f32[1,128], index: 6, kind: input, shape index: {}]   ;;  %s1170_s7 = inlined_call_operand.hbm [shape: f32[8,128], index: 7, kind: output, shape index: {}]  }
   0x1   :  { %13 = vsyncpa [#allocation6], 0 }
   0x2   :  { %14 = vsyncpa [#allocation9], 0  ;;  %s31_s26 = sshll.u32 %s1164_s1, 4  ;;  %s32_s26 = int_to_ptr.hbm [resolvable:$true] %s31_s26 }
   0x3   :  { %15 = vsyncpa [#allocation4], 0  ;;  %s964_s27 = smov [#allocation5]   ;;  %s21_s8 = sshll.u32 %s1163_s0, 4  ;;  %s22_s8 = int_to_ptr.hbm [resolvable:$true] %s21_s8 }
   0x4   :  { %s33_s28 = sshll.u32 %s964_s27, 4  ;;  %s965_s9 = smov 128   ;;  %s34_s28 = int_to_ptr.vmem [resolvable:$true] %s33_s28 }
   0x5   :  { %s966_s10 = smov 8   ;;  %s967_s11 = smov [#allocation2]  }
   0x6   :  { %39 = dma.hbm_to_vmem [thread:$0]  %s32_s26, 3584, %s34_s28, [#allocation6], %s965_s9, %s965_s9, %s966_s10  }
   0x7   :  { %s23_s12 = sshll.u32 %s967_s11, 4  ;;  %s46_s15 = sshll.u32 %s1166_s3, 4  ;;  %s24_s12 = int_to_ptr.vmem [resolvable:$true] %s23_s12  ;;  %s47_s15 = int_to_ptr.hbm [resolvable:$true] %s46_s15 }
   0x8   :  { %26 = dma.hbm_to_vmem [thread:$0]  %s22_s8, 640, %s24_s12, [#allocation3]  }
   0x9   :  { %s61_s17 = sshll.u32 %s1168_s5, 4  ;;  %s968_s18 = smov [#allocation7]   ;;  %s62_s17 = int_to_ptr.hbm [resolvable:$true] %s61_s17 }
   0xa   :  { %s48_s19 = sshll.u32 %s968_s18, 4  ;;  %s969_s0 = smov [#allocation8]   ;;  %s49_s19 = int_to_ptr.vmem [resolvable:$true] %s48_s19 }
   0xb   :  { %54 = dma.hbm_to_vmem [thread:$0]  %s47_s15, 18432, %s49_s19, [#allocation6], %s965_s9, %s965_s9, %s966_s10  }
   0xc   :  { %s63_s20 = sshll.u32 %s969_s0, 4  ;;  %s64_s20 = int_to_ptr.vmem [resolvable:$true] %s63_s20 }
   0xd   :  { %69 = dma.hbm_to_vmem [thread:$0]  %s62_s17, 2048, %s64_s20, [#allocation9], %s965_s9, %s965_s9, %s966_s10  }
   0xe   :  { %956 = dma.done.wait [#allocation3], 640  }
   0xf   :  { %957 = vsyncadd [#allocation3], 4294966656 }
  0x10   :  { %958 = dma.done.wait [#allocation6], 22016  }
  0x11   :  { %959 = vsyncadd [#allocation6], 4294945280 }
  0x12   :  { %960 = dma.done.wait [#allocation9], 2048  }
  0x13   :  { %961 = vsyncadd [#allocation9], 4294965248  ;;  %v1027_v0 = vld [vmem:[#allocation2] sm:$0xff]  ;;  %v1029_v1 = vld [vmem:[#allocation2 + $0x10] sm:$0xff]  ;;  %s970_s3 = smov 64   ;;  %s971_s5 = smov 96  }
  0x14   :  { %121 = vrot.lane.b32.xlu0 %v1027_v0, %s970_s3  ;;  %125 = vrot.lane.b32.xlu1 %v1029_v1, %s970_s3  ;;  %v1033_v2 = vld [vmem:[#allocation2 + $0x20] sm:$0xff]  ;;  %v175_v4 = vld [vmem:[#allocation5 + $0x70] sm:$0xff]  ;;  %v174_v5 = vld [vmem:[#allocation5 + $0x68] sm:$0xff]  ;;  %s972_s21 = smov 32   ;;  %vm116_vm0 = vcmask 785408   ;;  %vm99_vm1 = vcmask 523264  }
  0x15   :  { %v176_v3 = vld [vmem:[#allocation5 + $0x78] sm:$0xff]  ;;  %97 = vrot.lane.b32.xlu2 %v1033_v2, %s970_s3  ;;  %v187_v7 = vld [vmem:[#allocation5 + $0xd0] sm:$0xff]  ;;  %v173_v8 = vld [vmem:[#allocation5 + $0x60] sm:$0xff]  ;;  %v973_v43 = vmov 0.0   ;;  %vm108_vm2 = vcmask 261120   ;;  %s974_s26 = smov [#allocation10]  }
  0x16   :  { %230 = vmatpush.msra.mxu0 %v176_v3  ;;  %v188_v6 = vld [vmem:[#allocation5 + $0xd8] sm:$0xff]  ;;  %v186_v9 = vld [vmem:[#allocation5 + $0xc8] sm:$0xff]  ;;  %v1036_v10 = vld [vmem:[#allocation2 + $0x8] sm:$0xff]  ;;  %s786_s27 = sshll.u32 %s974_s26, 4  ;;  %s788_s30 = sshll.u32 %s1170_s7, 4  ;;  %s787_s27 = int_to_ptr.vmem [resolvable:$true] %s786_s27  ;;  %s789_s30 = int_to_ptr.hbm [resolvable:$true] %s788_s30 }
  0x17   :  { %305 = vmatpush.msra.mxu1 %v188_v6  ;;  %v1038_v11 = vld [vmem:[#allocation2 + $0x18] sm:$0xff]  ;;  %v172_v12 = vld [vmem:[#allocation5 + $0x58] sm:$0xff]  ;;  %v185_v13 = vld [vmem:[#allocation5 + $0xc0] sm:$0xff] }
  0x18   :  { %231 = vmatpush.msra.mxu0 %v175_v4  ;;  %v171_v14 = vld [vmem:[#allocation5 + $0x50] sm:$0xff]  ;;  %v184_v15 = vld [vmem:[#allocation5 + $0xb8] sm:$0xff]  ;;  %v170_v16 = vld [vmem:[#allocation5 + $0x48] sm:$0xff] }
  0x19   :  { %306 = vmatpush.msra.mxu1 %v187_v7  ;;  %v183_v17 = vld [vmem:[#allocation5 + $0xb0] sm:$0xff]  ;;  %v169_v18 = vld [vmem:[#allocation5 + $0x40] sm:$0xff]  ;;  %v168_v19 = vld [vmem:[#allocation5 + $0x38] sm:$0xff] }
  0x1a   :  { %232 = vmatpush.msra.mxu0 %v174_v5  ;;  %v182_v20 = vld [vmem:[#allocation5 + $0xa8] sm:$0xff]  ;;  %v167_v21 = vld [vmem:[#allocation5 + $0x30] sm:$0xff]  ;;  %v181_v22 = vld [vmem:[#allocation5 + $0xa0] sm:$0xff] }
  0x1b   :  { %307 = vmatpush.msra.mxu1 %v186_v9  ;;  %v166_v23 = vld [vmem:[#allocation5 + $0x28] sm:$0xff]  ;;  %v180_v24 = vld [vmem:[#allocation5 + $0x98] sm:$0xff]  ;;  %v165_v25 = vld [vmem:[#allocation5 + $0x20] sm:$0xff] }
  0x1c   :  { %233 = vmatpush.msra.mxu0 %v173_v8  ;;  %123 = vrot.lane.b32.xlu0 %v1036_v10, %s970_s3  ;;  %v164_v26 = vld [vmem:[#allocation5 + $0x18] sm:$0xff]  ;;  %v179_v27 = vld [vmem:[#allocation5 + $0x90] sm:$0xff]  ;;  %v178_v29 = vld [vmem:[#allocation5 + $0x88] sm:$0xff] }
  0x1d   :  { %95 = vrot.lane.b32.xlu1 %v1038_v11, %s970_s3  ;;  %133 = vrot.lane.b32.xlu2 %v1027_v0, %s971_s5  ;;  %v163_v28 = vld [vmem:[#allocation5 + $0x10] sm:$0xff]  ;;  %v162_v30 = vld [vmem:[#allocation5 + $0x8] sm:$0xff]  ;;  %v161_v31 = vld [vmem:[#allocation5] sm:$0xff] }
  0x1e   :  { %234 = vmatpush.msra.mxu0 %v172_v12  ;;  %308 = vmatpush.msra.mxu1 %v185_v13  ;;  %v177_v32 = vld [vmem:[#allocation5 + $0x80] sm:$0xff]  ;;  %v1095_v55 = vld [vmem:[%s1165_s2] ss:$0 sm:$0xff]  ;;  %v412_v4 = vld [vmem:[#allocation7 + $0x68] sm:$0xff] }
  0x1f   :  { %v411_v6 = vld [vmem:[#allocation7 + $0x60] sm:$0xff]  ;;  %v410_v7 = vld [vmem:[#allocation7 + $0x58] sm:$0xff]  ;;  %v409_v9 = vld [vmem:[#allocation7 + $0x50] sm:$0xff] }
  0x20   :  { %235 = vmatpush.msra.mxu0 %v171_v14  ;;  %309 = vmatpush.msra.mxu1 %v184_v15  ;;  %v430_v8 = vld [vmem:[#allocation7 + $0xf8] sm:$0xff]  ;;  %v428_v12 = vld [vmem:[#allocation7 + $0xe8] sm:$0xff]  ;;  %v407_v14 = vld [vmem:[#allocation7 + $0x40] sm:$0xff] }
  0x21   :  { %567 = vmatpush.msra.mxu3 %v430_v8  ;;  %v427_v15 = vld [vmem:[#allocation7 + $0xe0] sm:$0xff] }
  0x22   :  { %236 = vmatpush.msra.mxu0 %v170_v16  ;;  %310 = vmatpush.msra.mxu1 %v183_v17  ;;  %v406_v16 = vld [vmem:[#allocation7 + $0x38] sm:$0xff]  ;;  %v435_v8 = vld [vmem:[#allocation7 + $0x120] sm:$0xff] }
  0x23   :  { %v426_v17 = vld [vmem:[#allocation7 + $0xd8] sm:$0xff] }
  0x24   :  { %237 = vmatpush.msra.mxu0 %v169_v18  ;;  %135 = vrot.lane.b32.xlu0 %v1036_v10, %s971_s5  ;;  %v405_v18 = vld [vmem:[#allocation7 + $0x30] sm:$0xff] }
  0x25   :  { %139 = vrot.lane.b32.xlu1 %v1027_v0, %s972_s21  ;;  %141 = vrot.lane.b32.xlu2 %v1036_v10, %s972_s21 }
  0x26   :  { %238 = vmatpush.msra.mxu0 %v168_v19  ;;  %311 = vmatpush.msra.mxu1 %v182_v20  ;;  %v425_v19 = vld [vmem:[#allocation7 + $0xd0] sm:$0xff]  ;;  %v404_v20 = vld [vmem:[#allocation7 + $0x28] sm:$0xff] }
  0x28   :  { %239 = vmatpush.msra.mxu0 %v167_v21  ;;  %312 = vmatpush.msra.mxu1 %v181_v22  ;;  %v424_v21 = vld [vmem:[#allocation7 + $0xc8] sm:$0xff] }
  0x2a   :  { %240 = vmatpush.msra.mxu0 %v166_v23  ;;  %313 = vmatpush.msra.mxu1 %v180_v24  ;;  %v403_v24 = vld [vmem:[#allocation7 + $0x20] sm:$0xff] }
  0x2c   :  { %241 = vmatpush.msra.mxu0 %v165_v25  ;;  %143 = vrot.lane.b32.xlu0 %v1029_v1, %s972_s21  ;;  %v423_v25 = vld [vmem:[#allocation7 + $0xc0] sm:$0xff] }
  0x2d   :  { %148 = vrot.lane.b32.xlu1 %v1029_v1, %s971_s5  ;;  %314 = vmatpush.msra.mxu1 %v179_v27  ;;  %v402_v27 = vld [vmem:[#allocation7 + $0x18] sm:$0xff] }
  0x2e   :  { %242 = vmatpush.msra.mxu0 %v164_v26  ;;  %104 = vrot.lane.b32.xlu2 %v1038_v11, %s972_s21 }
  0x2f   :  { %315 = vmatpush.msra.mxu1 %v178_v29 }
  0x30   :  { %243 = vmatpush.msra.mxu0 %v163_v28  ;;  %v422_v28 = vld [vmem:[#allocation7 + $0xb8] sm:$0xff] }
  0x31   :  { %316 = vmatpush.msra.mxu1 %v177_v32  ;;  %v400_v32 = vld [vmem:[#allocation7 + $0x8] sm:$0xff] }
  0x32   :  { %244 = vmatpush.msra.mxu0 %v162_v30  ;;  %801 = vmatmul.msk.f32.vlgmr.msra.gmra.mxu1 %vm116_vm0, %v1036_v10  ;;  %v401_v30 = vld [vmem:[#allocation7 + $0x10] sm:$0xff] }
  0x34   :  { %154 = vrot.lane.b32.xlu0 %v1038_v11, %s971_s5  ;;  %245 = vmatpush.msra.mxu0 %v161_v31  ;;  %v421_v31 = vld [vmem:[#allocation7 + $0xb0] sm:$0xff] }
  0x35   :  { %106 = vrot.lane.b32.xlu1 %v1033_v2, %s972_s21  ;;  %246 = vmatmul.f32.vlgmr.msra.gmra.mxu0 %v1027_v0 }
  0x36   :  { %113 = vrot.lane.b32.xlu2 %v1033_v2, %s971_s5 }
  0x6f   :  { %v98_v40 = vpop.permute.xlu2 %97 }
  0x70   :  { %v103_v42 = vsel %vm99_vm1, %v98_v40, 0.0 }
  0x77   :  { %v134_v44 = vpop.permute.xlu2 %133 }
  0x7f   :  { %v142_v48 = vpop.permute.xlu2 %141 }
  0x86   :  { %v122_v33 = vpop.permute.xlu0 %121  ;;  %v126_v34 = vpop.permute.xlu1 %125 }
  0x88   :  { %v105_v54 = vpop.permute.xlu2 %104 }
  0x8e   :  { %v124_v35 = vpop.permute.xlu0 %123 }
  0x8f   :  { %v127_v36 = vsel %vm99_vm1, %v122_v33, %v124_v35  ;;  %v128_v37 = vsel %vm99_vm1, %v124_v35, %v126_v34  ;;  %v96_v38 = vpop.permute.xlu1 %95  ;;  %v420_v33 = vld [vmem:[#allocation7 + $0xa8] sm:$0xff] }
  0x90   :  { %249 = vmatmul.f32.gmra.mxu0 %v127_v36  ;;  %802 = vmatmul.msk.f32.gmra.mxu1 %vm116_vm0, %v128_v37  ;;  %v130_v39 = vsel %vm99_vm1, %v126_v34, %v96_v38  ;;  %v100_v41 = vsel %vm99_vm1, %v96_v38, %v98_v40  ;;  %v114_v3 = vpop.permute.xlu2 %113  ;;  %v399_v36 = vld [vmem:[#allocation7] sm:$0xff]  ;;  %v418_v40 = vld [vmem:[#allocation7 + $0x98] sm:$0xff] }
  0x96   :  { %v136_v45 = vpop.permute.xlu0 %135 }
  0x97   :  { %v137_v46 = vsel %vm116_vm0, %v134_v44, %v136_v45  ;;  %v140_v47 = vpop.permute.xlu1 %139  ;;  %v444_v44 = vld [vmem:[#allocation7 + $0x168] sm:$0xff] }
  0x98   :  { %252 = vmatmul.f32.gmra.mxu0 %v1036_v10  ;;  %803 = vmatmul.msk.f32.gmra.mxu1 %vm116_vm0, %v1029_v1  ;;  %v145_v50 = vsel %vm108_vm2, %v140_v47, %v142_v48  ;;  %v429_v10 = vld [vmem:[#allocation7 + $0xf0] sm:$0xff] }
  0x99   :  { %568 = vmatpush.msra.mxu3 %v429_v10 }
  0x9b   :  { %569 = vmatpush.msra.mxu3 %v428_v12 }
  0x9d   :  { %570 = vmatpush.msra.mxu3 %v427_v15 }
  0x9e   :  { %v144_v49 = vpop.permute.xlu0 %143 }
  0x9f   :  { %v146_v51 = vsel %vm108_vm2, %v142_v48, %v144_v49  ;;  %v149_v52 = vpop.permute.xlu1 %148  ;;  %v152_v56 = vsel %vm108_vm2, %v144_v49, %v105_v54  ;;  %571 = vmatpush.msra.mxu3 %v426_v17  ;;  %v415_v49 = vld [vmem:[#allocation7 + $0x80] sm:$0xff]  ;;  %v453_v17 = vld [vmem:[#allocation7 + $0x1b0] sm:$0xff] }
  0xa0   :  { %255 = vmatmul.f32.gmra.mxu0 %v128_v37  ;;  %804 = vmatmul.msk.f32.gmra.mxu1 %vm116_vm0, %v130_v39  ;;  %v150_v53 = vsel %vm116_vm0, %v136_v45, %v149_v52  ;;  %v419_v37 = vld [vmem:[#allocation7 + $0xa0] sm:$0xff] }
  0xa1   :  { %572 = vmatpush.msra.mxu3 %v425_v19  ;;  %v452_v19 = vld [vmem:[#allocation7 + $0x1a8] sm:$0xff] }
  0xa3   :  { %573 = vmatpush.msra.mxu3 %v424_v21  ;;  %v451_v21 = vld [vmem:[#allocation7 + $0x1a0] sm:$0xff] }
  0xa5   :  { %574 = vmatpush.msra.mxu3 %v423_v25  ;;  %v450_v25 = vld [vmem:[#allocation7 + $0x198] sm:$0xff] }
  0xa6   :  { %v155_v61 = vpop.permute.xlu0 %154 }
  0xa7   :  { %v156_v62 = vsel %vm116_vm0, %v149_v52, %v155_v61  ;;  %v107_v63 = vpop.permute.xlu1 %106  ;;  %v159_v5 = vsel %vm116_vm0, %v155_v61, %v114_v3  ;;  %575 = vmatpush.msra.mxu3 %v422_v28  ;;  %v448_v28 = vld [vmem:[#allocation7 + $0x188] sm:$0xff] }
  0xa8   :  { %258 = vmatmul.f32.gmra.mxu0 %v1029_v1  ;;  %805 = vmatmul.msk.f32.gmra.mxu1 %vm116_vm0, %v1038_v11  ;;  %v109_v0 = vsel %vm108_vm2, %v105_v54, %v107_v63  ;;  %v414_v1 = vld [vmem:[#allocation7 + $0x78] sm:$0xff]  ;;  %v112_v13 = vsel %vm108_vm2, %v107_v63, 0.0  ;;  %v441_v54 = vld [vmem:[#allocation7 + $0x150] sm:$0xff] }
  0xa9   :  { %547 = vmatpush.msra.mxu2 %v414_v1  ;;  %576 = vmatpush.msra.mxu3 %v421_v31  ;;  %v438_v1 = vld [vmem:[#allocation7 + $0x138] sm:$0xff] }
  0xab   :  { %577 = vmatpush.msra.mxu3 %v420_v33 }
  0xad   :  { %578 = vmatpush.msra.mxu3 %v419_v37 }
  0xaf   :  { %v318_v59 = vpop.f32.mrf.mxu1  ;;  %579 = vmatpush.msra.mxu3 %v418_v40 }
  0xb0   :  { %261 = vmatmul.f32.gmra.mxu0 %v130_v39  ;;  %806 = vmatmul.msk.f32.gmra.mxu1 %vm116_vm0, %v100_v41  ;;  %v446_v39 = vld [vmem:[#allocation7 + $0x178] sm:$0xff] }
  0xb2   :  { %v247_v57 = vpop.f32.mrf.mxu0 }
  0xb3   :  { %v248_v58 = vadd.f32 %v1095_v55, %v247_v57  ;;  %v440_v57 = vld [vmem:[#allocation7 + $0x148] sm:$0xff] }
  0xb5   :  { %v1100_v60 = vadd.f32 %v318_v59, %v248_v58  ;;  %v460_v58 = vld [vmem:[#allocation7 + $0x1e8] sm:$0xff]  ;;  %v439_v59 = vld [vmem:[#allocation7 + $0x140] sm:$0xff] }
  0xb8   :  { %264 = vmatmul.f32.gmra.mxu0 %v1038_v11  ;;  %807 = vmatmul.msk.f32.gmra.mxu1 %vm116_vm0, %v1033_v2  ;;  %v408_v11 = vld [vmem:[#allocation7 + $0x48] sm:$0xff] }
  0xc0   :  { %267 = vmatmul.f32.gmra.mxu0 %v100_v41  ;;  %808 = vmatmul.msk.f32.gmra.mxu1 %vm116_vm0, %v103_v42  ;;  %v445_v42 = vld [vmem:[#allocation7 + $0x170] sm:$0xff] }
  0xc8   :  { %270 = vmatmul.f32.gmra.mxu0 %v1033_v2  ;;  %341 = vmatmul.f32.gmra.mxu1 %v973_v43  ;;  %v413_v2 = vld [vmem:[#allocation7 + $0x70] sm:$0xff] }
  0xc9   :  { %548 = vmatpush.msra.mxu2 %v413_v2  ;;  %v458_v2 = vld [vmem:[#allocation7 + $0x1d8] sm:$0xff] }
  0xcb   :  { %549 = vmatpush.msra.mxu2 %v412_v4  ;;  %v437_v4 = vld [vmem:[#allocation7 + $0x130] sm:$0xff] }
  0xcd   :  { %550 = vmatpush.msra.mxu2 %v411_v6  ;;  %v436_v6 = vld [vmem:[#allocation7 + $0x128] sm:$0xff] }
  0xcf   :  { %551 = vmatpush.msra.mxu2 %v410_v7  ;;  %v456_v7 = vld [vmem:[#allocation7 + $0x1c8] sm:$0xff] }
  0xd0   :  { %273 = vmatmul.f32.gmra.mxu0 %v137_v46  ;;  %809 = vmatmul.msk.f32.gmra.mxu1 %vm116_vm0, %v136_v45  ;;  %v416_v45 = vld [vmem:[#allocation7 + $0x88] sm:$0xff]  ;;  %v443_v46 = vld [vmem:[#allocation7 + $0x160] sm:$0xff] }
  0xd1   :  { %552 = vmatpush.msra.mxu2 %v409_v9  ;;  %v455_v9 = vld [vmem:[#allocation7 + $0x1c0] sm:$0xff] }
  0xd3   :  { %553 = vmatpush.msra.mxu2 %v408_v11 }
  0xd5   :  { %554 = vmatpush.msra.mxu2 %v407_v14  ;;  %v454_v14 = vld [vmem:[#allocation7 + $0x1b8] sm:$0xff] }
  0xd7   :  { %555 = vmatpush.msra.mxu2 %v406_v16  ;;  %v433_v16 = vld [vmem:[#allocation7 + $0x110] sm:$0xff] }
  0xd8   :  { %276 = vmatmul.f32.gmra.mxu0 %v145_v50  ;;  %810 = vmatmul.msk.f32.gmra.mxu1 %vm116_vm0, %v146_v51 }
  0xd9   :  { %556 = vmatpush.msra.mxu2 %v405_v18  ;;  %v432_v18 = vld [vmem:[#allocation7 + $0x108] sm:$0xff] }
  0xdb   :  { %557 = vmatpush.msra.mxu2 %v404_v20  ;;  %v431_v20 = vld [vmem:[#allocation7 + $0x100] sm:$0xff] }
  0xdd   :  { %558 = vmatpush.msra.mxu2 %v403_v24 }
  0xdf   :  { %559 = vmatpush.msra.mxu2 %v402_v27  ;;  %v449_v27 = vld [vmem:[#allocation7 + $0x190] sm:$0xff] }
  0xe0   :  { %279 = vmatmul.f32.gmra.mxu0 %v150_v53  ;;  %811 = vmatmul.msk.f32.gmra.mxu1 %vm116_vm0, %v149_v52  ;;  %v462_v52 = vld [vmem:[#allocation7 + $0x1f8] sm:$0xff] }
  0xe1   :  { %560 = vmatpush.msra.mxu2 %v401_v30 }
  0xe3   :  { %561 = vmatpush.msra.mxu2 %v400_v32  ;;  %v447_v32 = vld [vmem:[#allocation7 + $0x180] sm:$0xff] }
  0xe5   :  { %562 = vmatpush.msra.mxu2 %v399_v36 }
  0xe7   :  { %587 = vmatpush.msrb.mxu2 %v446_v39 }
  0xe8   :  { %282 = vmatmul.f32.gmra.mxu0 %v146_v51  ;;  %812 = vmatmul.msk.f32.gmra.mxu1 %vm116_vm0, %v152_v56  ;;  %v442_v51 = vld [vmem:[#allocation7 + $0x158] sm:$0xff] }
  0xe9   :  { %588 = vmatpush.msrb.mxu2 %v445_v42 }
  0xeb   :  { %589 = vmatpush.msrb.mxu2 %v444_v44  ;;  %v372_v44 = vmax.f32 %v1100_v60, 0.0  ;;  %v474_v60 = vld [vmem:[#allocation7 + $0x258] sm:$0xff] }
  0xed   :  { %590 = vmatpush.msrb.mxu2 %v443_v46 }
  0xef   :  { %591 = vmatpush.msrb.mxu2 %v442_v51  ;;  %v477_v51 = vld [vmem:[#allocation7 + $0x270] sm:$0xff] }
  0xf0   :  { %285 = vmatmul.f32.gmra.mxu0 %v156_v62  ;;  %813 = vmatmul.msk.f32.gmra.mxu1 %vm116_vm0, %v155_v61  ;;  %v459_v61 = vld [vmem:[#allocation7 + $0x1e0] sm:$0xff] }
  0xf1   :  { %592 = vmatpush.msrb.mxu2 %v441_v54  ;;  %v476_v54 = vld [vmem:[#allocation7 + $0x268] sm:$0xff] }
  0xf3   :  { %593 = vmatpush.msrb.mxu2 %v440_v57 }
  0xf5   :  { %594 = vmatpush.msrb.mxu2 %v439_v59 }
  0xf7   :  { %595 = vmatpush.msrb.mxu2 %v438_v1  ;;  %v473_v1 = vld [vmem:[#allocation7 + $0x250] sm:$0xff] }
  0xf8   :  { %288 = vmatmul.f32.gmra.mxu0 %v152_v56  ;;  %814 = vmatmul.msk.f32.gmra.mxu1 %vm116_vm0, %v109_v0  ;;  %v461_v56 = vld [vmem:[#allocation7 + $0x1f0] sm:$0xff] }
  0xf9   :  { %596 = vmatpush.msrb.mxu2 %v437_v4 }
  0xfb   :  { %597 = vmatpush.msrb.mxu2 %v436_v6  ;;  %v492_v6 = vld [vmem:[#allocation7 + $0x2e8] sm:$0xff] }
  0xfd   :  { %598 = vmatpush.msrb.mxu2 %v435_v8  ;;  %v471_v8 = vld [vmem:[#allocation7 + $0x240] sm:$0xff] }
 0x100   :  { %291 = vmatmul.f32.gmra.mxu0 %v159_v5  ;;  %815 = vmatmul.msk.f32.gmra.mxu1 %vm116_vm0, %v114_v3  ;;  %v457_v5 = vld [vmem:[#allocation7 + $0x1d0] sm:$0xff] }
 0x108   :  { %294 = vmatmul.f32.gmra.mxu0 %v109_v0  ;;  %816 = vmatmul.msk.f32.gmra.mxu1 %vm116_vm0, %v112_v13  ;;  %v434_v13 = vld [vmem:[#allocation7 + $0x118] sm:$0xff] }
 0x109   :  { %599 = vmatpush.msrb.mxu2 %v434_v13 }
 0x10b   :  { %600 = vmatpush.msrb.mxu2 %v433_v16 }
 0x10d   :  { %v250_v22 = vpop.f32.mrf.mxu0  ;;  %v321_v23 = vpop.f32.mrf.mxu1  ;;  %601 = vmatpush.msrb.mxu2 %v432_v18  ;;  %v489_v18 = vld [vmem:[#allocation7 + $0x2d0] sm:$0xff] }
 0x10e   :  { %v251_v26 = vadd.f32 %v1095_v55, %v250_v22 }
 0x10f   :  { %602 = vmatpush.msrb.mxu2 %v431_v20  ;;  %v488_v20 = vld [vmem:[#allocation7 + $0x2c8] sm:$0xff] }
 0x110   :  { %v1111_v29 = vadd.f32 %v321_v23, %v251_v26  ;;  %800 = vmatmul.msk.f32.gmra.mxu0 %vm116_vm0, %v114_v3  ;;  %368 = vmatmul.f32.gmra.mxu1 %v973_v43  ;;  %v417_v43 = vld [vmem:[#allocation7 + $0x90] sm:$0xff] }
 0x111   :  { %580 = vmatpush.msra.mxu3 %v417_v43 }
 0x113   :  { %581 = vmatpush.msra.mxu3 %v416_v45 }
 0x115   :  { %v253_v34 = vpop.f32.mrf.mxu0  ;;  %v324_v35 = vpop.f32.mrf.mxu1  ;;  %582 = vmatpush.msra.mxu3 %v415_v49 }
 0x116   :  { %v254_v38 = vadd.f32 %v1095_v55, %v253_v34 }
 0x117   :  { %607 = vmatpush.msrb.mxu3 %v462_v52 }
 0x118   :  { %v1116_v41 = vadd.f32 %v324_v35, %v254_v38 }
 0x119   :  { %608 = vmatpush.msrb.mxu3 %v461_v56  ;;  %v373_v56 = vmax.f32 %v1111_v29, 0.0 }
 0x11a   :  { %v374_v29 = vmax.f32 %v1116_v41, 0.0 }
 0x11b   :  { %609 = vmatpush.msrb.mxu3 %v460_v58  ;;  %v475_v58 = vld [vmem:[#allocation7 + $0x260] sm:$0xff] }
 0x11d   :  { %v256_v47 = vpop.f32.mrf.mxu0  ;;  %v327_v48 = vpop.f32.mrf.mxu1  ;;  %610 = vmatpush.msrb.mxu3 %v459_v61  ;;  %v494_v61 = vld [vmem:[#allocation7 + $0x2f8] sm:$0xff] }
 0x11e   :  { %v257_v50 = vadd.f32 %v1095_v55, %v256_v47  ;;  %v478_v47 = vld [vmem:[#allocation7 + $0x278] sm:$0xff] }
 0x11f   :  { %611 = vmatpush.msrb.mxu3 %v458_v2  ;;  %v493_v2 = vld [vmem:[#allocation7 + $0x2f0] sm:$0xff] }
 0x120   :  { %v1119_v53 = vadd.f32 %v327_v48, %v257_v50 }
 0x121   :  { %612 = vmatpush.msrb.mxu3 %v457_v5  ;;  %v472_v5 = vld [vmem:[#allocation7 + $0x248] sm:$0xff] }
 0x123   :  { %613 = vmatpush.msrb.mxu3 %v456_v7 }
 0x125   :  { %v259_v62 = vpop.f32.mrf.mxu0  ;;  %v330_v63 = vpop.f32.mrf.mxu1  ;;  %614 = vmatpush.msrb.mxu3 %v455_v9  ;;  %v491_v9 = vld [vmem:[#allocation7 + $0x2e0] sm:$0xff] }
 0x126   :  { %v260_v0 = vadd.f32 %v1095_v55, %v259_v62 }
 0x127   :  { %615 = vmatpush.msrb.mxu3 %v454_v14 }
 0x128   :  { %v1122_v3 = vadd.f32 %v330_v63, %v260_v0 }
 0x129   :  { %616 = vmatpush.msrb.mxu3 %v453_v17  ;;  %v469_v17 = vld [vmem:[#allocation7 + $0x230] sm:$0xff] }
 0x12b   :  { %617 = vmatpush.msrb.mxu3 %v452_v19  ;;  %v468_v19 = vld [vmem:[#allocation7 + $0x228] sm:$0xff] }
 0x12d   :  { %v262_v10 = vpop.f32.mrf.mxu0  ;;  %v333_v11 = vpop.f32.mrf.mxu1  ;;  %618 = vmatpush.msrb.mxu3 %v451_v21  ;;  %v375_v21 = vmax.f32 %v1119_v53, 0.0 }
 0x12e   :  { %v263_v12 = vadd.f32 %v1095_v55, %v262_v10 }
 0x12f   :  { %619 = vmatpush.msrb.mxu3 %v450_v25 }
 0x130   :  { %v1125_v15 = vadd.f32 %v333_v11, %v263_v12  ;;  %v470_v11 = vld [vmem:[#allocation7 + $0x238] sm:$0xff] }
 0x131   :  { %620 = vmatpush.msrb.mxu3 %v449_v27  ;;  %v490_v12 = vld [vmem:[#allocation7 + $0x2d8] sm:$0xff] }
 0x132   :  { %v466_v27 = vld [vmem:[#allocation7 + $0x218] sm:$0xff] }
 0x133   :  { %621 = vmatpush.msrb.mxu3 %v448_v28  ;;  %v486_v28 = vld [vmem:[#allocation7 + $0x2b8] sm:$0xff] }
 0x135   :  { %v265_v22 = vpop.f32.mrf.mxu0  ;;  %v336_v23 = vpop.f32.mrf.mxu1  ;;  %622 = vmatpush.msrb.mxu3 %v447_v32 }
 0x136   :  { %v266_v24 = vadd.f32 %v1095_v55, %v265_v22 }
 0x138   :  { %v1128_v26 = vadd.f32 %v336_v23, %v266_v24  ;;  %v467_v23 = vld [vmem:[#allocation7 + $0x220] sm:$0xff] }
 0x139   :  { %v487_v24 = vld [vmem:[#allocation7 + $0x2c0] sm:$0xff] }
 0x13d   :  { %v268_v30 = vpop.f32.mrf.mxu0  ;;  %v339_v31 = vpop.f32.mrf.mxu1 }
 0x13e   :  { %v269_v33 = vadd.f32 %v1095_v55, %v268_v30 }
 0x140   :  { %v1131_v34 = vadd.f32 %v339_v31, %v269_v33  ;;  %v465_v33 = vld [vmem:[#allocation7 + $0x210] sm:$0xff] }
 0x145   :  { %v271_v35 = vpop.f32.mrf.mxu0  ;;  %v342_v36 = vpop.f32.mrf.mxu1 }
 0x146   :  { %v272_v37 = vadd.f32 %v1095_v55, %v271_v35  ;;  %v485_v35 = vld [vmem:[#allocation7 + $0x2b0] sm:$0xff] }
 0x148   :  { %v1134_v38 = vadd.f32 %v342_v36, %v272_v37  ;;  %v464_v36 = vld [vmem:[#allocation7 + $0x208] sm:$0xff] }
 0x149   :  { %v484_v37 = vld [vmem:[#allocation7 + $0x2a8] sm:$0xff] }
 0x14d   :  { %v274_v39 = vpop.f32.mrf.mxu0  ;;  %v345_v40 = vpop.f32.mrf.mxu1 }
 0x14e   :  { %v275_v42 = vadd.f32 %v1095_v55, %v274_v39  ;;  %v376_v39 = vmax.f32 %v1122_v3, 0.0  ;;  %v508_v3 = vld [vmem:[#allocation7 + $0x368] sm:$0xff] }
 0x150   :  { %v346_v43 = vadd.f32 %v345_v40, %v275_v42  ;;  %v463_v42 = vld [vmem:[#allocation7 + $0x200] sm:$0xff] }
 0x152   :  { %v381_v45 = vmax.f32 %v346_v43, 0.0  ;;  %v483_v43 = vld [vmem:[#allocation7 + $0x2a0] sm:$0xff] }
 0x154   :  { %v390_v46 = vmax.f32 %v372_v44, %v381_v45  ;;  %v510_v44 = vld [vmem:[#allocation7 + $0x378] sm:$0xff] }
 0x155   :  { %v277_v48 = vpop.f32.mrf.mxu0  ;;  %v348_v49 = vpop.f32.mrf.mxu1 }
 0x156   :  { %v278_v50 = vadd.f32 %v1095_v55, %v277_v48  ;;  %563 = vmatmul.f32.vlgmr.msra.gmra.mxu2 %v390_v46  ;;  %v482_v46 = vld [vmem:[#allocation7 + $0x298] sm:$0xff] }
 0x157   :  { %627 = vmatpush.msra.mxu2 %v478_v47 }
 0x158   :  { %v349_v52 = vadd.f32 %v348_v49, %v278_v50  ;;  %v509_v49 = vld [vmem:[#allocation7 + $0x370] sm:$0xff] }
 0x159   :  { %628 = vmatpush.msra.mxu2 %v477_v51  ;;  %v481_v51 = vld [vmem:[#allocation7 + $0x290] sm:$0xff] }
 0x15a   :  { %v382_v57 = vmax.f32 %v349_v52, 0.0 }
 0x15b   :  { %629 = vmatpush.msra.mxu2 %v476_v54  ;;  %v480_v54 = vld [vmem:[#allocation7 + $0x288] sm:$0xff] }
 0x15c   :  { %v391_v59 = vmax.f32 %v373_v56, %v382_v57  ;;  %v507_v56 = vld [vmem:[#allocation7 + $0x360] sm:$0xff]  ;;  %v377_v57 = vmax.f32 %v1125_v15, 0.0 }
 0x15d   :  { %630 = vmatpush.msra.mxu2 %v475_v58  ;;  %v280_v62 = vpop.f32.mrf.mxu0  ;;  %v351_v63 = vpop.f32.mrf.mxu1  ;;  %v523_v15 = vld [vmem:[#allocation7 + $0x3e0] sm:$0xff] }
 0x15e   :  { %v281_v0 = vadd.f32 %v1095_v55, %v280_v62  ;;  %583 = vmatmul.f32.vlgmr.msra.gmra.mxu3 %v391_v59  ;;  %v479_v59 = vld [vmem:[#allocation7 + $0x280] sm:$0xff] }
 0x15f   :  { %631 = vmatpush.msra.mxu2 %v474_v60  ;;  %647 = vmatpush.msra.mxu3 %v494_v61  ;;  %v506_v60 = vld [vmem:[#allocation7 + $0x358] sm:$0xff] }
 0x160   :  { %v352_v4 = vadd.f32 %v351_v63, %v281_v0  ;;  %v526_v61 = vld [vmem:[#allocation7 + $0x3f8] sm:$0xff]  ;;  %v505_v63 = vld [vmem:[#allocation7 + $0x350] sm:$0xff] }
 0x161   :  { %632 = vmatpush.msra.mxu2 %v473_v1  ;;  %648 = vmatpush.msra.mxu3 %v493_v2  ;;  %v525_v0 = vld [vmem:[#allocation7 + $0x3f0] sm:$0xff]  ;;  %v504_v1 = vld [vmem:[#allocation7 + $0x348] sm:$0xff] }
 0x162   :  { %v383_v7 = vmax.f32 %v352_v4, 0.0  ;;  %v524_v2 = vld [vmem:[#allocation7 + $0x3e8] sm:$0xff]  ;;  %v503_v4 = vld [vmem:[#allocation7 + $0x340] sm:$0xff] }
 0x163   :  { %633 = vmatpush.msra.mxu2 %v472_v5  ;;  %649 = vmatpush.msra.mxu3 %v492_v6  ;;  %v502_v6 = vld [vmem:[#allocation7 + $0x338] sm:$0xff] }
 0x164   :  { %v392_v10 = vmax.f32 %v374_v29, %v383_v7  ;;  %v522_v29 = vld [vmem:[#allocation7 + $0x3d8] sm:$0xff]  ;;  %v501_v7 = vld [vmem:[#allocation7 + $0x330] sm:$0xff] }
 0x165   :  { %634 = vmatpush.msra.mxu2 %v471_v8  ;;  %650 = vmatpush.msra.mxu3 %v491_v9  ;;  %v283_v13 = vpop.f32.mrf.mxu0  ;;  %v354_v14 = vpop.f32.mrf.mxu1  ;;  %v521_v8 = vld [vmem:[#allocation7 + $0x3d0] sm:$0xff] }
 0x166   :  { %v284_v16 = vadd.f32 %v1095_v55, %v283_v13  ;;  %603 = vmatmul.f32.vlgmr.msrb.gmra.mxu2 %v392_v10  ;;  %v499_v13 = vld [vmem:[#allocation7 + $0x320] sm:$0xff] }
 0x167   :  { %635 = vmatpush.msra.mxu2 %v470_v11  ;;  %651 = vmatpush.msra.mxu3 %v490_v12  ;;  %v500_v11 = vld [vmem:[#allocation7 + $0x328] sm:$0xff] }
 0x168   :  { %v355_v41 = vadd.f32 %v354_v14, %v284_v16  ;;  %v520_v12 = vld [vmem:[#allocation7 + $0x3c8] sm:$0xff]  ;;  %v519_v14 = vld [vmem:[#allocation7 + $0x3c0] sm:$0xff] }
 0x169   :  { %636 = vmatpush.msra.mxu2 %v469_v17  ;;  %652 = vmatpush.msra.mxu3 %v489_v18  ;;  %v498_v17 = vld [vmem:[#allocation7 + $0x318] sm:$0xff] }
 0x16a   :  { %v384_v22 = vmax.f32 %v355_v41, 0.0  ;;  %v518_v18 = vld [vmem:[#allocation7 + $0x3b8] sm:$0xff] }
 0x16b   :  { %637 = vmatpush.msra.mxu2 %v468_v19  ;;  %653 = vmatpush.msra.mxu3 %v488_v20  ;;  %v497_v19 = vld [vmem:[#allocation7 + $0x310] sm:$0xff] }
 0x16c   :  { %v393_v25 = vmax.f32 %v375_v21, %v384_v22  ;;  %v517_v20 = vld [vmem:[#allocation7 + $0x3b0] sm:$0xff] }
 0x16d   :  { %638 = vmatpush.msra.mxu2 %v467_v23  ;;  %654 = vmatpush.msra.mxu3 %v487_v24  ;;  %v286_v30 = vpop.f32.mrf.mxu0  ;;  %v357_v31 = vpop.f32.mrf.mxu1  ;;  %v496_v23 = vld [vmem:[#allocation7 + $0x308] sm:$0xff] }
 0x16e   :  { %v287_v32 = vadd.f32 %v1095_v55, %v286_v30  ;;  %623 = vmatmul.f32.vlgmr.msrb.gmra.mxu3 %v393_v25  ;;  %v516_v24 = vld [vmem:[#allocation7 + $0x3a8] sm:$0xff]  ;;  %v515_v30 = vld [vmem:[#allocation7 + $0x3a0] sm:$0xff] }
 0x16f   :  { %639 = vmatpush.msra.mxu2 %v466_v27  ;;  %655 = vmatpush.msra.mxu3 %v486_v28  ;;  %v378_v27 = vmax.f32 %v1128_v26, 0.0  ;;  %v495_v28 = vld [vmem:[#allocation7 + $0x300] sm:$0xff]  ;;  %v379_v26 = vmax.f32 %v1131_v34, 0.0 }
 0x170   :  { %v358_v53 = vadd.f32 %v357_v31, %v287_v32 }
 0x171   :  { %640 = vmatpush.msra.mxu2 %v465_v33  ;;  %656 = vmatpush.msra.mxu3 %v485_v35  ;;  %v542_v33 = vld [vmem:[#allocation7 + $0x478] sm:$0xff] }
 0x172   :  { %v385_v40 = vmax.f32 %v358_v53, 0.0  ;;  %v514_v35 = vld [vmem:[#allocation7 + $0x398] sm:$0xff]  ;;  %v541_v53 = vld [vmem:[#allocation7 + $0x470] sm:$0xff] }
 0x173   :  { %641 = vmatpush.msra.mxu2 %v464_v36  ;;  %657 = vmatpush.msra.mxu3 %v484_v37  ;;  %v513_v36 = vld [vmem:[#allocation7 + $0x390] sm:$0xff] }
 0x174   :  { %v394_v45 = vmax.f32 %v376_v39, %v385_v40  ;;  %v540_v39 = vld [vmem:[#allocation7 + $0x468] sm:$0xff] }
 0x175   :  { %642 = vmatpush.msra.mxu2 %v463_v42  ;;  %658 = vmatpush.msra.mxu3 %v483_v43  ;;  %v289_v47 = vpop.f32.mrf.mxu0  ;;  %v360_v48 = vpop.f32.mrf.mxu1  ;;  %v512_v40 = vld [vmem:[#allocation7 + $0x388] sm:$0xff]  ;;  %v539_v42 = vld [vmem:[#allocation7 + $0x460] sm:$0xff] }
 0x176   :  { %v290_v50 = vadd.f32 %v1095_v55, %v289_v47  ;;  %643 = vmatmul.f32.vlgmr.msra.gmra.mxu2 %v394_v45  ;;  %v511_v43 = vld [vmem:[#allocation7 + $0x380] sm:$0xff]  ;;  %v538_v45 = vld [vmem:[#allocation7 + $0x458] sm:$0xff]  ;;  %v536_v47 = vld [vmem:[#allocation7 + $0x448] sm:$0xff] }
 0x177   :  { %667 = vmatpush.msrb.mxu2 %v510_v44  ;;  %659 = vmatpush.msra.mxu3 %v482_v46  ;;  %v537_v46 = vld [vmem:[#allocation7 + $0x450] sm:$0xff] }
 0x178   :  { %v361_v52 = vadd.f32 %v360_v48, %v290_v50  ;;  %v535_v48 = vld [vmem:[#allocation7 + $0x440] sm:$0xff] }
 0x179   :  { %668 = vmatpush.msrb.mxu2 %v509_v49  ;;  %660 = vmatpush.msra.mxu3 %v481_v51  ;;  %v534_v49 = vld [vmem:[#allocation7 + $0x438] sm:$0xff]  ;;  %v533_v51 = vld [vmem:[#allocation7 + $0x430] sm:$0xff] }
 0x17a   :  { %v386_v58 = vmax.f32 %v361_v52, 0.0 }
 0x17b   :  { %669 = vmatpush.msrb.mxu2 %v508_v3  ;;  %661 = vmatpush.msra.mxu3 %v480_v54  ;;  %v532_v3 = vld [vmem:[#allocation7 + $0x428] sm:$0xff]  ;;  %v531_v54 = vld [vmem:[#allocation7 + $0x420] sm:$0xff] }
 0x17c   :  { %v395_v62 = vmax.f32 %v377_v57, %v386_v58  ;;  %v530_v57 = vld [vmem:[#allocation7 + $0x418] sm:$0xff]  ;;  %v529_v58 = vld [vmem:[#allocation7 + $0x410] sm:$0xff] }
 0x17d   :  { %670 = vmatpush.msrb.mxu2 %v507_v56  ;;  %662 = vmatpush.msra.mxu3 %v479_v59  ;;  %v292_v5 = vpop.f32.mrf.mxu0  ;;  %v363_v9 = vpop.f32.mrf.mxu1 }
 0x17e   :  { %663 = vmatmul.f32.vlgmr.msra.gmra.mxu3 %v395_v62  ;;  %v293_v10 = vadd.f32 %v1095_v55, %v292_v5  ;;  %v527_v62 = vld [vmem:[#allocation7 + $0x400] sm:$0xff] }
 0x17f   :  { %671 = vmatpush.msrb.mxu2 %v506_v60  ;;  %687 = vmatpush.msrb.mxu3 %v526_v61  ;;  %v528_v60 = vld [vmem:[#allocation7 + $0x408] sm:$0xff]  ;;  %v380_v61 = vmax.f32 %v1134_v38, 0.0 }
 0x180   :  { %v364_v16 = vadd.f32 %v363_v9, %v293_v10 }
 0x181   :  { %672 = vmatpush.msrb.mxu2 %v505_v63  ;;  %688 = vmatpush.msrb.mxu3 %v525_v0 }
 0x182   :  { %v387_v21 = vmax.f32 %v364_v16, 0.0 }
 0x183   :  { %673 = vmatpush.msrb.mxu2 %v504_v1  ;;  %689 = vmatpush.msrb.mxu3 %v524_v2 }
 0x184   :  { %v396_v31 = vmax.f32 %v378_v27, %v387_v21  ;;  %v748_v21 = vld [vmem:[#allocation8 + $0x50] sm:$0xff] }
 0x185   :  { %674 = vmatpush.msrb.mxu2 %v503_v4  ;;  %690 = vmatpush.msrb.mxu3 %v523_v15  ;;  %v295_v41 = vpop.f32.mrf.mxu0  ;;  %v366_v25 = vpop.f32.mrf.mxu1  ;;  %v830_v4 = vld [vmem:[%s1167_s4] ss:$0 sm:$0xff] }
 0x186   :  { %v296_v22 = vadd.f32 %v1095_v55, %v295_v41  ;;  %v751_v41 = vld [vmem:[#allocation8 + $0x68] sm:$0xff] }
 0x187   :  { %675 = vmatpush.msrb.mxu2 %v502_v6  ;;  %691 = vmatpush.msrb.mxu3 %v522_v29 }
 0x188   :  { %v367_v32 = vadd.f32 %v366_v25, %v296_v22  ;;  %v747_v22 = vld [vmem:[#allocation8 + $0x48] sm:$0xff] }
 0x189   :  { %676 = vmatpush.msrb.mxu2 %v501_v7  ;;  %692 = vmatpush.msrb.mxu3 %v521_v8 }
 0x18a   :  { %v388_v37 = vmax.f32 %v367_v32, 0.0  ;;  %v743_v32 = vld [vmem:[#allocation8 + $0x28] sm:$0xff] }
 0x18b   :  { %677 = vmatpush.msrb.mxu2 %v500_v11  ;;  %693 = vmatpush.msrb.mxu3 %v520_v12 }
 0x18c   :  { %v397_v44 = vmax.f32 %v379_v26, %v388_v37  ;;  %v738_v37 = vld [vmem:[#allocation8] sm:$0xff] }
 0x18d   :  { %678 = vmatpush.msrb.mxu2 %v499_v13  ;;  %694 = vmatpush.msrb.mxu3 %v519_v14  ;;  %v298_v50 = vpop.f32.mrf.mxu0  ;;  %v369_v52 = vpop.f32.mrf.mxu1 }
 0x18e   :  { %v299_v34 = vadd.f32 %v1095_v55, %v298_v50 }
 0x18f   :  { %679 = vmatpush.msrb.mxu2 %v498_v17  ;;  %695 = vmatpush.msrb.mxu3 %v518_v18  ;;  %v753_v17 = vld [vmem:[#allocation8 + $0x78] sm:$0xff]  ;;  %v752_v18 = vld [vmem:[#allocation8 + $0x70] sm:$0xff] }
 0x190   :  { %v370_v56 = vadd.f32 %v369_v52, %v299_v34 }
 0x191   :  { %680 = vmatpush.msrb.mxu2 %v497_v19  ;;  %696 = vmatpush.msrb.mxu3 %v517_v20  ;;  %v750_v19 = vld [vmem:[#allocation8 + $0x60] sm:$0xff]  ;;  %v749_v20 = vld [vmem:[#allocation8 + $0x58] sm:$0xff] }
 0x192   :  { %v389_v59 = vmax.f32 %v370_v56, 0.0 }
 0x193   :  { %681 = vmatpush.msrb.mxu2 %v496_v23  ;;  %697 = vmatpush.msrb.mxu3 %v516_v24  ;;  %v746_v23 = vld [vmem:[#allocation8 + $0x40] sm:$0xff]  ;;  %v745_v24 = vld [vmem:[#allocation8 + $0x38] sm:$0xff] }
 0x194   :  { %v398_v63 = vmax.f32 %v380_v61, %v389_v59 }
 0x195   :  { %682 = vmatpush.msrb.mxu2 %v495_v28  ;;  %698 = vmatpush.msrb.mxu3 %v515_v30 }
 0x196   :  { %683 = vmatmul.f32.vlgmr.msrb.gmra.mxu2 %v396_v31  ;;  %v744_v31 = vld [vmem:[#allocation8 + $0x30] sm:$0xff] }
 0x197   :  { %707 = vmatpush.msra.mxu2 %v542_v33  ;;  %699 = vmatpush.msrb.mxu3 %v514_v35  ;;  %v742_v33 = vld [vmem:[#allocation8 + $0x20] sm:$0xff]  ;;  %v741_v35 = vld [vmem:[#allocation8 + $0x18] sm:$0xff] }
 0x199   :  { %708 = vmatpush.msra.mxu2 %v541_v53  ;;  %700 = vmatpush.msrb.mxu3 %v513_v36  ;;  %v740_v53 = vld [vmem:[#allocation8 + $0x10] sm:$0xff]  ;;  %v739_v36 = vld [vmem:[#allocation8 + $0x8] sm:$0xff] }
 0x19b   :  { %709 = vmatpush.msra.mxu2 %v540_v39  ;;  %701 = vmatpush.msrb.mxu3 %v512_v40 }
 0x19d   :  { %710 = vmatpush.msra.mxu2 %v539_v42  ;;  %702 = vmatpush.msrb.mxu3 %v511_v43 }
 0x19e   :  { %703 = vmatmul.f32.vlgmr.msrb.gmra.mxu3 %v397_v44  ;;  %v831_v44 = vld [vmem:[%s1169_s6] ss:$0 sm:$0xff] }
 0x19f   :  { %711 = vmatpush.msra.mxu2 %v538_v45  ;;  %758 = vmatpush.msra.mxu3 %v753_v17 }
 0x1a1   :  { %712 = vmatpush.msra.mxu2 %v537_v46  ;;  %759 = vmatpush.msra.mxu3 %v752_v18 }
 0x1a3   :  { %713 = vmatpush.msra.mxu2 %v536_v47  ;;  %760 = vmatpush.msra.mxu3 %v751_v41 }
 0x1a5   :  { %714 = vmatpush.msra.mxu2 %v535_v48  ;;  %761 = vmatpush.msra.mxu3 %v750_v19 }
 0x1a7   :  { %715 = vmatpush.msra.mxu2 %v534_v49  ;;  %762 = vmatpush.msra.mxu3 %v749_v20 }
 0x1a9   :  { %716 = vmatpush.msra.mxu2 %v533_v51  ;;  %763 = vmatpush.msra.mxu3 %v748_v21 }
 0x1ab   :  { %717 = vmatpush.msra.mxu2 %v532_v3  ;;  %764 = vmatpush.msra.mxu3 %v747_v22 }
 0x1ad   :  { %718 = vmatpush.msra.mxu2 %v531_v54  ;;  %765 = vmatpush.msra.mxu3 %v746_v23 }
 0x1af   :  { %719 = vmatpush.msra.mxu2 %v530_v57  ;;  %766 = vmatpush.msra.mxu3 %v745_v24 }
 0x1b1   :  { %720 = vmatpush.msra.mxu2 %v529_v58  ;;  %767 = vmatpush.msra.mxu3 %v744_v31 }
 0x1b3   :  { %721 = vmatpush.msra.mxu2 %v528_v60  ;;  %768 = vmatpush.msra.mxu3 %v743_v32 }
 0x1b5   :  { %722 = vmatpush.msra.mxu2 %v527_v62  ;;  %769 = vmatpush.msra.mxu3 %v742_v33 }
 0x1b6   :  { %723 = vmatmul.f32.vlgmr.msra.gmra.mxu2 %v398_v63 }
 0x1b7   :  { %770 = vmatpush.msra.mxu3 %v741_v35 }
 0x1b9   :  { %771 = vmatpush.msra.mxu3 %v740_v53 }
 0x1bb   :  { %772 = vmatpush.msra.mxu3 %v739_v36 }
 0x1bd   :  { %773 = vmatpush.msra.mxu3 %v738_v37 }
 0x1d9   :  { %v564_v55 = vpop.f32.mrf.mxu2 }
 0x1da   :  { %v565_v5 = vadd.f32 %v830_v4, %v564_v55 }
 0x1e1   :  { %v584_v0 = vpop.f32.mrf.mxu3 }
 0x1e2   :  { %v585_v6 = vadd.f32 %v584_v0, %v565_v5 }
 0x1e9   :  { %v604_v1 = vpop.f32.mrf.mxu2 }
 0x1ea   :  { %v605_v7 = vadd.f32 %v604_v1, %v585_v6 }
 0x1f1   :  { %v624_v2 = vpop.f32.mrf.mxu3 }
 0x1f2   :  { %v625_v8 = vadd.f32 %v624_v2, %v605_v7 }
 0x1f9   :  { %v644_v15 = vpop.f32.mrf.mxu2 }
 0x1fa   :  { %v645_v9 = vadd.f32 %v644_v15, %v625_v8 }
 0x201   :  { %v664_v29 = vpop.f32.mrf.mxu3 }
 0x202   :  { %v665_v10 = vadd.f32 %v664_v29, %v645_v9 }
 0x219   :  { %v684_v38 = vpop.f32.mrf.mxu2 }
 0x21a   :  { %v685_v12 = vadd.f32 %v684_v38, %v665_v10 }
 0x221   :  { %v704_v11 = vpop.f32.mrf.mxu3 }
 0x222   :  { %v705_v13 = vadd.f32 %v704_v11, %v685_v12 }
 0x239   :  { %v724_v14 = vpop.f32.mrf.mxu2 }
 0x23a   :  { %v725_v16 = vadd.f32 %v724_v14, %v705_v13 }
 0x23c   :  { %727 = vmax.xlane.f32.xlu0 %v725_v16 }
 0x2af   :  { %v728_v25 = vpop.xlane.xlu0 %727 }
 0x2b0   :  { %v729_v27 = vsub.f32 %v725_v16, %v728_v25 }
 0x2b2   :  { %v730_v28 = vmul.f32 1.442695, %v729_v27 }
 0x2b4   :  { %832 = vpow2.f32 %v730_v28 }
 0x2ba   :  { %v833_v30 = vpop.eup %832 }
 0x2bb   :  { %732 = vadd.xlane.f32.xlu1 %v833_v30 }
 0x32e   :  { %v733_v39 = vpop.xlane.xlu1 %732 }
 0x32f   :  { %834 = vlog2.f32 %v733_v39 }
 0x335   :  { %v835_v40 = vpop.eup %834 }
 0x336   :  { %v735_v26 = vmul.f32 0.6931472, %v835_v40 }
 0x338   :  { %v736_v42 = vadd.f32 %v735_v26, %v728_v25 }
 0x33a   :  { %v737_v43 = vsub.f32 %v725_v16, %v736_v42 }
 0x33c   :  { %774 = vmatmul.f32.vlgmr.msra.gmra.mxu3 %v737_v43 }
 0x3bf   :  { %v775_v45 = vpop.f32.mrf.mxu3 }
 0x3c0   :  { %v776_v46 = vadd.f32 %v831_v44, %v775_v45 }
 0x3c2   :  { %v817_v47 = vclamps-f32 %v776_v46, 3.0 }
 0x3c4   :  { %780 = vst [vmem:[#allocation10] sm:$0xff] %v817_v47 }
 0x3c5   :  { %791 = dma.vmem_to_hbm [thread:$0]  %s787_s27, 128, %s789_s30, [#allocation4]  }
 0x3c6   :  { %962 = dma.done.wait [#allocation4], 128  }
 0x3c7   :  { %963 = vsyncadd [#allocation4], 4294967168 }
 0x3c8   :  { %796 = vsyncpa [#allocation3], 1 }
 0x3c9   :  { %797 = vsyncpa [#allocation6], 1 }
 0x3ca   :  { %798 = vsyncpa [#allocation9], 1 }
 0x3cb   :  { %799 = vsyncpa [#allocation4], 1 }

</bundles_post_ra>
